<compile_context>
chip_gen: v7x
topology: tpu7x:2x2x1
jax: 0.10.0
libtpu: 0.0.40
codegen_flags: <defaults>
</compile_context>

<pallas_src>
import functools

import jax
import jax.numpy as jnp
from jax.experimental import pallas as pl
from jax.experimental.pallas import tpu as pltpu

LANE = 128               # lane width of a vreg (last-dim alignment)
SUBLANE = 8              # sublane count of a vreg (second-last-dim alignment)
MAX_ROWS_PER_STEP = 512  # single-grid-step cutoff; above this, tile the batch


def _round_up(x, m):
    return ((x + m - 1) // m) * m


def _cdiv(a, b):
    return -(-a // b)


def fused_mlp_kernel(x_ref, w0_ref, wr_ref, b_ref, o_ref, *, n_layers):
    # x_ref : [TB, in_f]      f32  (natural input width, no lane padding)
    # w0_ref: [in_f, D]       bf16 (layer-0 weight, pre-transposed to [in,out])
    # wr_ref: [L-1, D, D]     bf16 (layers 1..L-1, pre-transposed, zero-padded)
    # b_ref : [L, 1, D]       f32  (zero-padded biases)
    # o_ref : [TB, D]         f32
    h = x_ref[...].astype(jnp.bfloat16)                            # [TB, in_f]
    y = jnp.dot(h, w0_ref[...], preferred_element_type=jnp.float32)  # MXU, f32 acc
    h = jnp.maximum(y + b_ref[0], 0.0)                             # VPU: bias + ReLU (f32)
    for l in range(1, n_layers):                                   # static unroll (L tiny)
        y = jnp.dot(h.astype(jnp.bfloat16), wr_ref[l - 1],
                    preferred_element_type=jnp.float32)
        h = jnp.maximum(y + b_ref[l], 0.0)
    o_ref[...] = h


def pack_params(params, weight_dtype=jnp.bfloat16):
    """Pack per-layer PyTorch-layout (W [out,in], b [out]) params.

    Returns:
      w0      [in_f0, D]   layer-0 weight, transposed to [in,out], out-padded
      w_rest  [L-1, D, D]  layers 1..L-1, transposed, zero-padded
      b_stack [L, 1, D]    biases, zero-padded (f32)
    with D = round_up(max feature dim, 128).  Weights in `weight_dtype`
    (bf16 by default: MXU-native on v5e/v6e/v7x; accumulation stays f32).
    Zero padding keeps padded lanes exactly 0 through every bias+ReLU.
    """
    n_layers = len(params)
    assert n_layers >= 2, "module always has >=1 hidden layer plus the head"
    in_f0 = params[0][0].shape[1]
    dims = [in_f0] + [w.shape[0] for (w, _) in params]
    d_pad = _round_up(max(dims), LANE)

    w0_raw, b0_raw = params[0]
    out_f0 = w0_raw.shape[0]
    w0 = jnp.zeros((in_f0, d_pad), weight_dtype)
    w0 = w0.at[:, :out_f0].set(w0_raw.T.astype(weight_dtype))

    w_rest = jnp.zeros((n_layers - 1, d_pad, d_pad), weight_dtype)
    b_stack = jnp.zeros((n_layers, 1, d_pad), jnp.float32)
    b_stack = b_stack.at[0, 0, :out_f0].set(b0_raw.astype(jnp.float32))
    for l in range(1, n_layers):
        w, b = params[l]
        out_f, in_f = w.shape
        w_rest = w_rest.at[l - 1, :in_f, :out_f].set(w.T.astype(weight_dtype))
        b_stack = b_stack.at[l, 0, :out_f].set(b.astype(jnp.float32))
    return w0, w_rest, b_stack


@functools.partial(jax.jit, static_argnums=(4,))
def linear_deep_q_forward(x, w0, w_rest, b_stack, n_actions):
    """forward(): x = relu(layer(x)) for every layer, one fused pallas_call."""
    B, in_f = x.shape
    n_layers = b_stack.shape[0]
    d_pad = b_stack.shape[2]
    x = x.astype(jnp.float32)

    # Batch tiling: single grid step (block == full array, no padding) for
    # typical replay-batch sizes; otherwise >=2 balanced 8-aligned tiles so
    # v7x's dual TensorCores both get work, with at most 8*n_steps pad rows.
    if B <= MAX_ROWS_PER_STEP:
        tb, b_rows = B, B
    else:
        n_steps = max(2, _cdiv(B, MAX_ROWS_PER_STEP))
        tb = _round_up(_cdiv(B, n_steps), SUBLANE)
        b_rows = tb * n_steps
    x_in = x if b_rows == B else jnp.pad(x, ((0, b_rows - B), (0, 0)))

    flops = 2 * b_rows * (in_f * d_pad + (n_layers - 1) * d_pad * d_pad)
    bytes_accessed = (x_in.size * x_in.dtype.itemsize
                      + w0.size * w0.dtype.itemsize
                      + w_rest.size * w_rest.dtype.itemsize
                      + b_stack.size * b_stack.dtype.itemsize
                      + b_rows * d_pad * 4)

    out = pl.pallas_call(
        functools.partial(fused_mlp_kernel, n_layers=n_layers),
        out_shape=jax.ShapeDtypeStruct((b_rows, d_pad), jnp.float32),
        grid_spec=pltpu.PrefetchScalarGridSpec(
            num_scalar_prefetch=0,
            grid=(b_rows // tb,),
            in_specs=[
                pl.BlockSpec((tb, in_f), lambda i: (i, 0)),
                pl.BlockSpec((in_f, d_pad), lambda i: (0, 0)),
                pl.BlockSpec((n_layers - 1, d_pad, d_pad), lambda i: (0, 0, 0)),
                pl.BlockSpec((n_layers, 1, d_pad), lambda i: (0, 0, 0)),
            ],
            out_specs=pl.BlockSpec((tb, d_pad), lambda i: (i, 0)),
        ),
        compiler_params=pltpu.CompilerParams(
            dimension_semantics=("parallel",),
        ),
        cost_estimate=pl.CostEstimate(
            flops=flops, transcendentals=0, bytes_accessed=bytes_accessed),
    )(x_in, w0, w_rest, b_stack)

    # Keep the in-kernel store 128-lane dense; slice the real block here.
    return out[:B, :n_actions]


def init_linear_params(key, in_f, out_f):
    """Deterministic init mimicking nn.Linear's default U(-1/sqrt(in), 1/sqrt(in))."""
    kw, kb = jax.random.split(key)
    bound = 1.0 / jnp.sqrt(jnp.float32(in_f))
    w = jax.random.uniform(kw, (out_f, in_f), jnp.float32, -bound, bound)
    b = jax.random.uniform(kb, (out_f,), jnp.float32, -bound, bound)
    return w, b


def make_model_params(key, input_dims, layer_dims, n_actions):
    """Mirrors LinearDeepQModel.create_model_layers() (PyTorch [out, in] layout)."""
    dims = [input_dims[0]] + list(layer_dims) + [n_actions]
    params = []
    for i in range(len(dims) - 1):
        key, sub = jax.random.split(key)
        params.append(init_linear_params(sub, dims[i], dims[i + 1]))
    return params


if __name__ == "__main__":
    # Shapes consistent with the module's constructor:
    #   input_dims=(8,), layer_dims=[32, 32], n_actions=4, batch=2
    batch = 2
    input_dims = (8,)
    layer_dims = [32, 32]
    n_actions = 4

    key = jax.random.PRNGKey(0)
    key_x, key_p = jax.random.split(key)

    x = jax.random.normal(key_x, (batch, input_dims[0]), jnp.float32)
    params = make_model_params(key_p, input_dims, layer_dims, n_actions)

    # Pack / pad / transpose / bf16-cast once (not per forward call).
    w0, w_rest, b_stack = pack_params(params)

    out = linear_deep_q_forward(x, w0, w_rest, b_stack, n_actions)
    out = jax.block_until_ready(out)
    assert out.shape == (batch, n_actions)

    hi = jax.lax.Precision.HIGHEST

    # Tight check: reference applying the same bf16 rounding of weights and
    # activations that the kernel uses (f32 accumulation, ReLU after EVERY
    # layer including the head, as in the module's forward()).
    ref_q = x
    for w, b in params:
        w_q = w.astype(jnp.bfloat16).astype(jnp.float32)
        h_q = ref_q.astype(jnp.bfloat16).astype(jnp.float32)
        ref_q = jnp.maximum(jnp.dot(h_q, w_q.T, precision=hi) + b, 0.0)
    assert jnp.allclose(out, ref_q, atol=2e-3, rtol=2e-3)

    # Loose check against the pure-f32 module semantics (differences are only
    # bf16 weight/activation rounding).
    ref = x
    for w, b in params:
        ref = jnp.maximum(jnp.dot(ref, w.T, precision=hi) + b, 0.0)
    assert jnp.allclose(out, ref, atol=5e-2, rtol=5e-2)

    print("KERNEL_OK")
</pallas_src>

<mosaic_0001>
module attributes {stable_mosaic.version = 11 : i64} {
  func.func @fused_mlp_kernel(%arg0: i32, %arg1: memref<2x8xf32, #tpu.memory_space<vmem>>, %arg2: memref<8x128xbf16, #tpu.memory_space<vmem>>, %arg3: memref<2x128x128xbf16, #tpu.memory_space<vmem>>, %arg4: memref<3x1x128xf32, #tpu.memory_space<vmem>>, %arg5: memref<2x128xf32, #tpu.memory_space<vmem>>) attributes {dimension_semantics = [#tpu.dimension_semantics<parallel>], iteration_bounds = array<i64: 1>, scalar_prefetch = 0 : i64, scratch_operands = 0 : i64, tpu.core_type = #tpu.core_type<tc>, window_params = [{transform_indices = @transform_0, window_bounds = array<i64: 2, 8>}, {pipeline_mode = #tpu.pipeline_mode<synchronous>, transform_indices = @transform_1, window_bounds = array<i64: 8, 128>}, {pipeline_mode = #tpu.pipeline_mode<synchronous>, transform_indices = @transform_2, window_bounds = array<i64: 2, 128, 128>}, {pipeline_mode = #tpu.pipeline_mode<synchronous>, transform_indices = @transform_3, window_bounds = array<i64: 3, 1, 128>}, {transform_indices = @transform_4, window_bounds = array<i64: 2, 128>}]} {
    %c0 = arith.constant 0 : index
    %c0_0 = arith.constant 0 : index
    %0 = vector.load %arg1[%c0, %c0_0] : memref<2x8xf32, #tpu.memory_space<vmem>>, vector<2x8xf32>
    %1 = arith.truncf %0 : vector<2x8xf32> to vector<2x8xbf16>
    %c0_1 = arith.constant 0 : index
    %c0_2 = arith.constant 0 : index
    %2 = vector.load %arg2[%c0_1, %c0_2] : memref<8x128xbf16, #tpu.memory_space<vmem>>, vector<8x128xbf16>
    %cst = arith.constant dense<0.000000e+00> : vector<2x128xf32>
    %3 = tpu.matmul %1, %2, %cst {dimension_numbers = #tpu.dot_dimension_numbers<[1], [0], [0], [1], [0, 0, 1, 1], [], []>} : vector<2x8xbf16>, vector<8x128xbf16>, vector<2x128xf32> -> vector<2x128xf32>
    %c0_3 = arith.constant 0 : index
    %c0_4 = arith.constant 0 : index
    %c0_5 = arith.constant 0 : index
    %4 = vector.load %arg4[%c0_3, %c0_4, %c0_5] : memref<3x1x128xf32, #tpu.memory_space<vmem>>, vector<1x1x128xf32>
    %5 = vector.shape_cast %4 : vector<1x1x128xf32> to vector<1x128xf32>
    %6 = vector.broadcast %5 : vector<1x128xf32> to vector<2x128xf32>
    %7 = arith.addf %3, %6 : vector<2x128xf32>
    %cst_6 = arith.constant 0.000000e+00 : f32
    %8 = vector.broadcast %cst_6 : f32 to vector<2x128xf32>
    %9 = arith.maximumf %7, %8 : vector<2x128xf32>
    %10 = arith.truncf %9 : vector<2x128xf32> to vector<2x128xbf16>
    %c0_7 = arith.constant 0 : index
    %c0_8 = arith.constant 0 : index
    %c0_9 = arith.constant 0 : index
    %11 = vector.load %arg3[%c0_7, %c0_8, %c0_9] : memref<2x128x128xbf16, #tpu.memory_space<vmem>>, vector<1x128x128xbf16>
    %12 = vector.shape_cast %11 : vector<1x128x128xbf16> to vector<128x128xbf16>
    %cst_10 = arith.constant dense<0.000000e+00> : vector<2x128xf32>
    %13 = tpu.matmul %10, %12, %cst_10 {dimension_numbers = #tpu.dot_dimension_numbers<[1], [0], [0], [1], [0, 0, 1, 1], [], []>} : vector<2x128xbf16>, vector<128x128xbf16>, vector<2x128xf32> -> vector<2x128xf32>
    %c1 = arith.constant 1 : index
    %c0_11 = arith.constant 0 : index
    %c0_12 = arith.constant 0 : index
    %14 = vector.load %arg4[%c1, %c0_11, %c0_12] : memref<3x1x128xf32, #tpu.memory_space<vmem>>, vector<1x1x128xf32>
    %15 = vector.shape_cast %14 : vector<1x1x128xf32> to vector<1x128xf32>
    %16 = vector.broadcast %15 : vector<1x128xf32> to vector<2x128xf32>
    %17 = arith.addf %13, %16 : vector<2x128xf32>
    %cst_13 = arith.constant 0.000000e+00 : f32
    %18 = vector.broadcast %cst_13 : f32 to vector<2x128xf32>
    %19 = arith.maximumf %17, %18 : vector<2x128xf32>
    %20 = arith.truncf %19 : vector<2x128xf32> to vector<2x128xbf16>
    %c1_14 = arith.constant 1 : index
    %c0_15 = arith.constant 0 : index
    %c0_16 = arith.constant 0 : index
    %21 = vector.load %arg3[%c1_14, %c0_15, %c0_16] : memref<2x128x128xbf16, #tpu.memory_space<vmem>>, vector<1x128x128xbf16>
    %22 = vector.shape_cast %21 : vector<1x128x128xbf16> to vector<128x128xbf16>
    %cst_17 = arith.constant dense<0.000000e+00> : vector<2x128xf32>
    %23 = tpu.matmul %20, %22, %cst_17 {dimension_numbers = #tpu.dot_dimension_numbers<[1], [0], [0], [1], [0, 0, 1, 1], [], []>} : vector<2x128xbf16>, vector<128x128xbf16>, vector<2x128xf32> -> vector<2x128xf32>
    %c2 = arith.constant 2 : index
    %c0_18 = arith.constant 0 : index
    %c0_19 = arith.constant 0 : index
    %24 = vector.load %arg4[%c2, %c0_18, %c0_19] : memref<3x1x128xf32, #tpu.memory_space<vmem>>, vector<1x1x128xf32>
    %25 = vector.shape_cast %24 : vector<1x1x128xf32> to vector<1x128xf32>
    %26 = vector.broadcast %25 : vector<1x128xf32> to vector<2x128xf32>
    %27 = arith.addf %23, %26 : vector<2x128xf32>
    %cst_20 = arith.constant 0.000000e+00 : f32
    %28 = vector.broadcast %cst_20 : f32 to vector<2x128xf32>
    %29 = arith.maximumf %27, %28 : vector<2x128xf32>
    %c0_21 = arith.constant 0 : index
    %c0_22 = arith.constant 0 : index
    %30 = vector.load %arg5[%c0_21, %c0_22] : memref<2x128xf32, #tpu.memory_space<vmem>>, vector<2x128xf32>
    tpu.vector_store %arg5[%c0_21, %c0_22], %29 {strides = array<i32>} : memref<2x128xf32, #tpu.memory_space<vmem>>, vector<2x128xf32>,
    return
  }
  func.func @transform_0(%arg0: i32) -> (i32, i32) {
    %c0_i32 = arith.constant 0 : i32
    %c0_i32_0 = arith.constant 0 : i32
    return %arg0, %c0_i32 : i32, i32
  }
  func.func @transform_1(%arg0: i32) -> (i32, i32) {
    %c0_i32 = arith.constant 0 : i32
    %c0_i32_0 = arith.constant 0 : i32
    %c0_i32_1 = arith.constant 0 : i32
    return %c0_i32, %c0_i32_0 : i32, i32
  }
  func.func @transform_2(%arg0: i32) -> (i32, i32, i32) {
    %c0_i32 = arith.constant 0 : i32
    %c0_i32_0 = arith.constant 0 : i32
    %c0_i32_1 = arith.constant 0 : i32
    %c0_i32_2 = arith.constant 0 : i32
    return %c0_i32, %c0_i32_0, %c0_i32_1 : i32, i32, i32
  }
  func.func @transform_3(%arg0: i32) -> (i32, i32, i32) {
    %c0_i32 = arith.constant 0 : i32
    %c0_i32_0 = arith.constant 0 : i32
    %c0_i32_1 = arith.constant 0 : i32
    %c0_i32_2 = arith.constant 0 : i32
    return %c0_i32, %c0_i32_0, %c0_i32_1 : i32, i32, i32
  }
  func.func @transform_4(%arg0: i32) -> (i32, i32) {
    %c0_i32 = arith.constant 0 : i32
    %c0_i32_0 = arith.constant 0 : i32
    return %arg0, %c0_i32 : i32, i32
  }
}

</mosaic_0001>

<bundles_post_ra>
// kernel: linear_deep_q_forward.1
= control target key start
LH: loop header
LB: loop body
LE: loop exit
PB: predicated region body
PF: predicated region fallthrough
CT: control target
= control target key end

     0   :  { %9 = vsyncpa [#allocation3], 0  ;;  %s680_s0 = inlined_call_operand.hbm [shape: f32[2,8], index: 0, kind: input, shape index: {}]   ;;  %s681_s1 = inlined_call_operand.hbm [shape: bf16[8,128], index: 1, kind: input, shape index: {}]   ;;  %s682_s2 = inlined_call_operand.hbm [shape: bf16[2,128,128], index: 2, kind: input, shape index: {}]   ;;  %s683_s3 = inlined_call_operand.vmem [shape: f32[3,1,128], index: 3, kind: input, shape index: {}]   ;;  %s684_s4 = inlined_call_operand.hbm [shape: f32[2,128], index: 4, kind: output, shape index: {}]  }
   0x1   :  { %10 = vsyncpa [#allocation6], 0 }
   0x2   :  { %11 = vsyncpa [#allocation4], 0  ;;  %s567_s15 = smov [#allocation5]   ;;  %s568_s17 = smov [#allocation2]  }
   0x3   :  { %s28_s16 = sshll.u32 %s567_s15, 4  ;;  %s18_s18 = sshll.u32 %s568_s17, 4  ;;  %s29_s16 = int_to_ptr.vmem [resolvable:$true] %s28_s16  ;;  %s19_s18 = int_to_ptr.vmem [resolvable:$true] %s18_s18 }
   0x4   :  { %s473_s21 = scalar_lea.hbm %s681_s1, 64 }
   0x5   :  { %p474_p0 = scmp.ne.s32.totalorder %s681_s1, %s473_s21  ;;  %p477_p1 = scmp.lt.u32.totalorder %s473_s21, %s681_s1 }
   0x7   :  { %p479_p2 = pnand %p477_p1, %p474_p0 }
   0x9   :  { %482 = shalt.err (!%p479_p2)
}
   0xa   :  { %s483_s26 = scalar_lea.vmem %s29_s16, 64  ;;  %p488_p4 = scmp.lt.s32.totalorder %s29_s16, %s29_s16 }
   0xb   :  { %p484_p3 = scmp.ne.s32.totalorder %s29_s16, %s483_s26  ;;  %p489_p5 = scmp.lt.s32.totalorder %s483_s26, %s483_s26 }
   0xd   :  { %p490_p6 = por %p489_p5, %p488_p4 }
   0xf   :  { %p491_p7 = pnand %p490_p6, %p484_p3 }
  0x11   :  { %494 = shalt.err (!%p491_p7)
}
  0x12   :  { %31 = dma.hbm_to_vmem [thread:$0]  %s681_s1, 64, %s29_s16, [#allocation6]  }
  0x13   :  { %s495_s5 = scalar_lea.hbm %s680_s0, 32 }
  0x14   :  { %p496_p8 = scmp.ne.s32.totalorder %s680_s0, %s495_s5  ;;  %p499_p9 = scmp.lt.u32.totalorder %s495_s5, %s680_s0 }
  0x16   :  { %p501_p10 = pnand %p499_p9, %p496_p8 }
  0x18   :  { %504 = shalt.err (!%p501_p10)
}
  0x19   :  { %s505_s10 = scalar_lea.vmem %s19_s18, 32  ;;  %p510_p12 = scmp.lt.s32.totalorder %s19_s18, %s19_s18 }
  0x1a   :  { %p506_p11 = scmp.ne.s32.totalorder %s19_s18, %s505_s10  ;;  %p511_p13 = scmp.lt.s32.totalorder %s505_s10, %s505_s10 }
  0x1c   :  { %p512_p0 = por %p511_p13, %p510_p12 }
  0x1e   :  { %p513_p1 = pnand %p512_p0, %p506_p11 }
  0x20   :  { %516 = shalt.err (!%p513_p1)
}
  0x21   :  { %21 = dma.hbm_to_vmem [thread:$0]  %s680_s0, 32, %s19_s18, [#allocation3]  }
  0x22   :  { %s569_s12 = smov [#allocation7]   ;;  %s517_s16 = scalar_lea.hbm %s682_s2, 2048 }
  0x23   :  { %s37_s13 = sshll.u32 %s569_s12, 4  ;;  %p518_p2 = scmp.ne.s32.totalorder %s682_s2, %s517_s16  ;;  %s38_s13 = int_to_ptr.vmem [resolvable:$true] %s37_s13 }
  0x24   :  { %p521_p3 = scmp.lt.u32.totalorder %s517_s16, %s682_s2 }
  0x26   :  { %p523_p4 = pnand %p521_p3, %p518_p2 }
  0x28   :  { %526 = shalt.err (!%p523_p4)
}
  0x29   :  { %s527_s22 = scalar_lea.vmem %s38_s13, 2048  ;;  %p532_p6 = scmp.lt.s32.totalorder %s38_s13, %s38_s13 }
  0x2a   :  { %p528_p5 = scmp.ne.s32.totalorder %s38_s13, %s527_s22  ;;  %p533_p7 = scmp.lt.s32.totalorder %s527_s22, %s527_s22 }
  0x2c   :  { %p534_p8 = por %p533_p7, %p532_p6 }
  0x2e   :  { %p535_p9 = pnand %p534_p8, %p528_p5 }
  0x30   :  { %538 = shalt.err (!%p535_p9)
}
  0x31   :  { %s570_s0 = smov 64   ;;  %s571_s18 = smov 4  }
  0x32   :  { %43 = dma.hbm_to_vmem [thread:$0]  %s682_s2, 2048, %s38_s13, [#allocation6], %s570_s0, %s570_s0, %s571_s18  }
  0x33   :  { %561 = dma.done.wait [#allocation3], 32  }
  0x34   :  { %562 = vsyncadd [#allocation3], 4294967264 }
  0x35   :  { %563 = dma.done.wait [#allocation6], 2112  }
  0x36   :  { %564 = vsyncadd [#allocation6], 4294965184  ;;  %v572_v0 = vmov 0.0   ;;  %vm573_vm0 = vmmov 0   ;;  %vm70_vm1 = vcmask 1043456   ;;  %v457_v5 = vld [vmem:[#allocation7] sm:$0xff]  }
  0x37   :  { %403 = vmatprep.subr.bf16.mxu0 %v572_v0  ;;  %405 = vmatprep.mubr.msk.bf16.mxu0 %vm573_vm0, %v572_v0  ;;  %v58_v1 = vld [vmem:[#allocation5] sm:$0xf]  ;;  %v56_v2 = vld [vmem:[#allocation2] sm:$0x3]  ;;  %vm66_vm2 = vcmask 64512   ;;  %v458_v6 = vld [vmem:[#allocation7 + $0x8] sm:$0xff]  }
  0x38   :  { %409 = vmatprep.subr.bf16.mxu1 %v572_v0  ;;  %425 = vmatprep.mubr.msk.bf16.mxu1 %vm573_vm0, %v572_v0  ;;  %v72_v3 = vsel %vm70_vm1, %v58_v1, 0  ;;  %v57_v4 = vpack.c.bf16 %v56_v2, %v56_v2  ;;  %v459_v7 = vld [vmem:[#allocation7 + $0x10] sm:$0xff]   ;;  %v460_v8 = vld [vmem:[#allocation7 + $0x18] sm:$0xff]   ;;  %v461_v9 = vld [vmem:[#allocation7 + $0x20] sm:$0xff]   ;;  %s574_s30 = smov [#allocation8]  }
  0x39   :  { %404 = vmatpush3.bf16.msra.mxu0 %v72_v3  ;;  %410 = vmatpush3.bf16.msra.mxu1 %v457_v5  ;;  %v462_v10 = vld [vmem:[#allocation7 + $0x28] sm:$0xff]   ;;  %v463_v11 = vld [vmem:[#allocation7 + $0x30] sm:$0xff]   ;;  %v464_v12 = vld [vmem:[#allocation7 + $0x38] sm:$0xff]   ;;  %s351_s5 = sshll.u32 %s574_s30, 4  ;;  %s352_s5 = int_to_ptr.vmem [resolvable:$true] %s351_s5 }
  0x3a   :  { %429 = vmatprep.subr.bf16.mxu0 %v572_v0  ;;  %411 = vmatprep.subr.bf16.mxu1 %v572_v0  ;;  %v465_v13 = vld [vmem:[#allocation7 + $0x40] sm:$0xff]   ;;  %v466_v14 = vld [vmem:[#allocation7 + $0x48] sm:$0xff]   ;;  %v467_v15 = vld [vmem:[#allocation7 + $0x50] sm:$0xff]   ;;  %s539_s6 = scalar_lea.vmem %s352_s5, 32  ;;  %p544_p11 = scmp.lt.s32.totalorder %s352_s5, %s352_s5 }
  0x3b   :  { %v468_v16 = vld [vmem:[#allocation7 + $0x58] sm:$0xff]   ;;  %v469_v17 = vld [vmem:[#allocation7 + $0x60] sm:$0xff]   ;;  %v470_v18 = vld [vmem:[#allocation7 + $0x68] sm:$0xff]   ;;  %p540_p10 = scmp.ne.s32.totalorder %s352_s5, %s539_s6  ;;  %p545_p12 = scmp.lt.s32.totalorder %s539_s6, %s539_s6 }
  0x3c   :  { %406 = vmatmul.mubr.msk.bf16.vlgmr.msra.gmra.mrb[0].mxu0 %vm66_vm2, %v57_v4  ;;  %v361_v19 = vld [vmem:[%s683_s3] ss:$0 sm:$0xff]  ;;  %v472_v28 = vld [vmem:[#allocation7 + $0x78] sm:$0xff]   ;;  %v364_v29 = vld [vmem:[%s683_s3 + $0x1] ss:$0 sm:$0xff] }
  0x3d   :  { %445 = vmatprep.mubr.msk.bf16.mxu0 %vm573_vm0, %v572_v0  ;;  %412 = vmatpush3.bf16.msra.mxu1 %v458_v6  ;;  %v471_v27 = vld [vmem:[#allocation7 + $0x70] sm:$0xff]   ;;  %p546_p13 = por %p545_p12, %p544_p11 }
  0x3e   :  { %413 = vmatprep.subr.bf16.mxu1 %v572_v0  ;;  %430 = vmatpush3.bf16.msra.mxu0 %v465_v13  ;;  %v374_v37 = vld [vmem:[%s683_s3 + $0x2] ss:$0 sm:$0xff] }
  0x3f   :  { %431 = vmatprep.subr.bf16.mxu0 %v572_v0  ;;  %p547_p0 = pnand %p546_p13, %p540_p10 }
  0x41   :  { %414 = vmatpush3.bf16.msra.mxu1 %v459_v7 }
  0x42   :  { %415 = vmatprep.subr.bf16.mxu1 %v572_v0  ;;  %432 = vmatpush3.bf16.msra.mxu0 %v466_v14 }
  0x43   :  { %433 = vmatprep.subr.bf16.mxu0 %v572_v0 }
  0x45   :  { %416 = vmatpush3.bf16.msra.mxu1 %v460_v8 }
  0x46   :  { %417 = vmatprep.subr.bf16.mxu1 %v572_v0  ;;  %434 = vmatpush3.bf16.msra.mxu0 %v467_v15 }
  0x47   :  { %435 = vmatprep.subr.bf16.mxu0 %v572_v0 }
  0x49   :  { %418 = vmatpush3.bf16.msra.mxu1 %v461_v9 }
  0x4a   :  { %419 = vmatprep.subr.bf16.mxu1 %v572_v0  ;;  %436 = vmatpush3.bf16.msra.mxu0 %v468_v16 }
  0x4b   :  { %437 = vmatprep.subr.bf16.mxu0 %v572_v0 }
  0x4d   :  { %420 = vmatpush3.bf16.msra.mxu1 %v462_v10 }
  0x4e   :  { %421 = vmatprep.subr.bf16.mxu1 %v572_v0  ;;  %438 = vmatpush3.bf16.msra.mxu0 %v469_v17 }
  0x4f   :  { %439 = vmatprep.subr.bf16.mxu0 %v572_v0 }
  0x51   :  { %422 = vmatpush3.bf16.msra.mxu1 %v463_v11 }
  0x52   :  { %423 = vmatprep.subr.bf16.mxu1 %v572_v0  ;;  %440 = vmatpush3.bf16.msra.mxu0 %v470_v18 }
  0x53   :  { %441 = vmatprep.subr.bf16.mxu0 %v572_v0 }
  0x55   :  { %424 = vmatpush3.bf16.msra.mxu1 %v464_v12 }
  0x56   :  { %442 = vmatpush3.bf16.msra.mxu0 %v471_v27 }
  0x57   :  { %443 = vmatprep.subr.bf16.mxu0 %v572_v0 }
  0x5a   :  { %444 = vmatpush3.bf16.msra.mxu0 %v472_v28 }
 0x10f   :  { %v108_v20 = vpop.f32.mrb[0].mxu0 }
 0x110   :  { %v109_v21 = vadd.f32 %v361_v19, %v108_v20  ;;  %v407_v22 = vpop.f32.mrb[1].mxu0 }
 0x111   :  { %v111_v23 = vpop.f32.mrb[2].mxu0 }
 0x112   :  { %v114_v24 = vmax.f32 %v109_v21, 0.0  ;;  %v408_v25 = vpop.f32.mrb[3].mxu0 }
 0x114   :  { %v115_v26 = vpack.c.bf16 %v114_v24, %v114_v24 }
 0x116   :  { %426 = vmatmul.mubr.bf16.vlgmr.msra.gmra.mrb[0].mxu1 %v115_v26 }
 0x1e9   :  { %v222_v30 = vpop.f32.mrb[0].mxu1 }
 0x1ea   :  { %v223_v31 = vadd.f32 %v364_v29, %v222_v30  ;;  %v427_v32 = vpop.f32.mrb[1].mxu1 }
 0x1eb   :  { %v225_v33 = vpop.f32.mrb[2].mxu1 }
 0x1ec   :  { %v228_v34 = vmax.f32 %v223_v31, 0.0  ;;  %v428_v35 = vpop.f32.mrb[3].mxu1 }
 0x1ee   :  { %v229_v36 = vpack.c.bf16 %v228_v34, %v228_v34 }
 0x1f0   :  { %446 = vmatmul.mubr.bf16.vlgmr.msra.gmra.mrb[4].mxu0 %v229_v36 }
 0x2c3   :  { %v337_v38 = vpop.f32.mrb[4].mxu0 }
 0x2c4   :  { %v338_v39 = vadd.f32 %v374_v37, %v337_v38  ;;  %v447_v40 = vpop.f32.mrb[5].mxu0 }
 0x2c5   :  { %v340_v41 = vpop.f32.mrb[6].mxu0 }
 0x2c6   :  { %v343_v42 = vmax.f32 %v338_v39, 0.0  ;;  %v448_v43 = vpop.f32.mrb[7].mxu0 }
 0x2c8   :  { %344 = vst [vmem:[#allocation8] sm:$0x3] %v343_v42 }
 0x2c9   :  { %550 = shalt.err (!%p547_p0)
}
 0x2ca   :  { %s551_s3 = scalar_lea.hbm %s684_s4, 32 }
 0x2cb   :  { %p552_p1 = scmp.ne.s32.totalorder %s684_s4, %s551_s3  ;;  %p555_p2 = scmp.lt.u32.totalorder %s551_s3, %s684_s4 }
 0x2cd   :  { %p557_p3 = pnand %p555_p2, %p552_p1 }
 0x2cf   :  { %560 = shalt.err (!%p557_p3)
}
 0x2d0   :  { %354 = dma.vmem_to_hbm [thread:$0]  %s352_s5, 32, %s684_s4, [#allocation4]  }
 0x2d1   :  { %565 = dma.done.wait [#allocation4], 32  }
 0x2d2   :  { %566 = vsyncadd [#allocation4], 4294967264 }
 0x2d3   :  { %358 = vsyncpa [#allocation3], 1 }
 0x2d4   :  { %359 = vsyncpa [#allocation6], 1 }
 0x2d5   :  { %360 = vsyncpa [#allocation4], 1 }

</bundles_post_ra>
